<compile_context>
chip_gen: v7x
topology: tpu7x:2x2x1
jax: 0.10.0
libtpu: 0.0.40
codegen_flags: <defaults>
</compile_context>

<pallas_src>
import functools

import jax
import jax.numpy as jnp
from jax import lax
from jax.experimental import pallas as pl
from jax.experimental.pallas import tpu as pltpu

N_POS = 20  # number of positive items per user used by the forward pass
_MAX_OUT_TILE_BYTES = 12 * 1024 * 1024  # per buffer; double-buffered -> 24 MiB


def _round_up(x, m):
    return ((x + m - 1) // m) * m


def _pick_tile(size, align, cap):
    """Tile size: multiple of `align`, <= cap, dividing `size` when possible
    (so no padding and no post-kernel slice is needed)."""
    cap = max(align, (cap // align) * align)
    padded = _round_up(size, align)
    if padded <= cap:
        return padded                          # single tile covers everything
    if size % align == 0:
        # prefer a tile that divides `size` exactly, unless that would shrink
        # the tile below cap/4 (too much per-step overhead)
        lo = max(align, (cap // 4 // align) * align)
        for t in range(cap, lo - 1, -align):
            if size % t == 0:
                return t
    return cap


def _recommender_kernel(hit_ref, pos_ref, param_ref, out_ref, *, item_axis):
    """hit_ref: (gi*gj,) int32 SMEM (scalar-prefetched per-tile skip flags),
    pos_ref: (TB, 20) int32 VMEM, param_ref: (1, 1) f32 SMEM,
    out_ref: (TB, TN) f32 VMEM (one item tile of the dense output)."""
    batch_axis = 1 - item_axis
    i = pl.program_id(batch_axis)          # batch-tile index
    j = pl.program_id(item_axis)           # item-tile index
    gj = pl.num_programs(item_axis)
    tb, tn = out_ref.shape

    has_hit = hit_ref[i * gj + j]

    @pl.when(has_hit == 0)
    def _():
        # no positive of this batch tile lands in this item tile: pure store
        out_ref[...] = jnp.zeros_like(out_ref)

    @pl.when(has_hit != 0)
    def _():
        # grid-invariant raw iota; item-tile offset goes onto the (TB,20) pos
        col = lax.broadcasted_iota(jnp.int32, (tb, tn), 1)
        pos_local = pos_ref[...] - j * tn                  # (TB, 20)
        # first compare seeds the mask; 19 more compare+OR (VPU, lane-parallel)
        mask = col == pos_local[:, 0:1]
        for k in range(1, N_POS):                          # static unrolled
            mask = mask | (col == pos_local[:, k:k + 1])
        val = param_ref[0, 0] + 100.0
        out_ref[...] = jnp.where(mask, val, jnp.float32(0.0))


def perfect_recommender_forward(users_ids, users_pos_items, param, num_items,
                                *, tile_b=512, tile_n=4096):
    """JAX/Pallas equivalent of PerfectRecommender.forward."""
    # glue: gather the 20 positive item ids for each user in the batch
    batch_pos = users_pos_items[users_ids, :N_POS].astype(jnp.int32)   # (B, 20)
    b = batch_pos.shape[0]

    # --- tile sizing --------------------------------------------------------
    tb = _pick_tile(b, 8, max(8, tile_b))                       # sublane mult
    # cap TN so the double-buffered output tile stays <= ~24 MiB (v7x VMEM)
    cap_n = max(128, (_MAX_OUT_TILE_BYTES // (tb * 4)) // 128 * 128)
    tn = _pick_tile(num_items, 128, min(max(128, tile_n), cap_n))
    b_total = _round_up(b, tb)
    n_total = _round_up(num_items, tn)
    gi, gj = b_total // tb, n_total // tn

    # pad batch rows with -1 (never matches any in-tile column id >= 0)
    if b_total != b:
        pad_rows = jnp.full((b_total - b, N_POS), -1, dtype=jnp.int32)
        batch_pos = jnp.concatenate([batch_pos, pad_rows], axis=0)

    # --- per-(batch-tile, item-tile) has-hit flags (scalar prefetch) --------
    row_tiles = batch_pos // tn                                    # (b_total, 20)
    hit = (row_tiles[:, :, None] ==
           jnp.arange(gj, dtype=jnp.int32)[None, None, :]).any(axis=1)
    hit = hit.reshape(gi, tb, gj).any(axis=1)                      # (gi, gj)
    hit_flat = hit.astype(jnp.int32).reshape(-1)                   # (gi*gj,)

    param_smem = jnp.reshape(param.astype(jnp.float32), (1, 1))

    # --- grid ordering: larger parallel extent first (megacore split) -------
    if gj >= gi:
        grid, item_axis = (gj, gi), 0
        pos_spec = pl.BlockSpec((tb, N_POS), lambda jj, ii, _hit: (ii, 0))
        out_spec = pl.BlockSpec((tb, tn), lambda jj, ii, _hit: (ii, jj))
    else:
        grid, item_axis = (gi, gj), 1
        pos_spec = pl.BlockSpec((tb, N_POS), lambda ii, jj, _hit: (ii, 0))
        out_spec = pl.BlockSpec((tb, tn), lambda ii, jj, _hit: (ii, jj))

    # VMEM: double-buffered output tile + lane-padded (TB, 128) pos tiles.
    vmem_bytes = 2 * (tb * tn * 4) + 2 * (tb * 128 * 4) + (4 << 20)
    vmem_bytes = max(vmem_bytes, 8 << 20)

    out_padded = pl.pallas_call(
        functools.partial(_recommender_kernel, item_axis=item_axis),
        out_shape=jax.ShapeDtypeStruct((b_total, n_total), jnp.float32),
        grid_spec=pltpu.PrefetchScalarGridSpec(
            num_scalar_prefetch=1,                        # hit table -> SMEM
            grid=grid,
            in_specs=[
                pos_spec,
                pl.BlockSpec(memory_space=pltpu.SMEM),    # param scalar
            ],
            out_specs=out_spec,
        ),
        compiler_params=pltpu.CompilerParams(
            dimension_semantics=("parallel", "parallel"),
            vmem_limit_bytes=vmem_bytes),
    )(hit_flat, batch_pos, param_smem)

    # slice padding back off only when padding was actually added
    if b_total != b or n_total != num_items:
        return out_padded[:b, :num_items]
    return out_padded


def _reference(users_ids, users_pos_items, param, num_items):
    """Pure-JAX reference matching the PyTorch scatter semantics."""
    pos = users_pos_items[users_ids, :N_POS]                  # (B, 20)
    b = pos.shape[0]
    out = jnp.zeros((b, num_items), jnp.float32)
    rows = jnp.arange(b)[:, None]
    return out.at[rows, pos].set(param + 100.0)


if __name__ == "__main__":
    num_users, num_items, batch = 16, 256, 8

    key = jax.random.PRNGKey(0)
    k_tbl, k_ids = jax.random.split(key)
    # deterministic "parameters" of the module
    users_pos_items = jax.random.randint(
        k_tbl, (num_users, N_POS), 0, num_items, dtype=jnp.int32)
    param = jnp.float32(100.0)  # nn.Parameter(torch.tensor(100.0))

    users_ids = jax.random.randint(k_ids, (batch,), 0, num_users, dtype=jnp.int32)

    out = perfect_recommender_forward(users_ids, users_pos_items, param, num_items)
    out = jax.block_until_ready(out)

    ref = _reference(users_ids, users_pos_items, param, num_items)
    assert out.shape == (batch, num_items) and out.dtype == jnp.float32
    assert jnp.allclose(out, ref), "mismatch vs reference"

    # non-multiple batch / item sizes -> padding, multi-tile grid, post-slice
    num_items2, batch2 = 3000, 37
    upi2 = jax.random.randint(k_tbl, (num_users, N_POS), 0, num_items2,
                              dtype=jnp.int32)
    ids2 = jax.random.randint(k_ids, (batch2,), 0, num_users, dtype=jnp.int32)
    out2 = jax.block_until_ready(
        perfect_recommender_forward(ids2, upi2, param, num_items2,
                                    tile_b=32, tile_n=512))
    ref2 = _reference(ids2, upi2, param, num_items2)
    assert jnp.allclose(out2, ref2), "mismatch vs reference (tiled case)"

    # sparse catalog: most item tiles contain no positives -> exercises the
    # scalar-prefetched pl.when skip path (pure zero-store tiles)
    num_items3, batch3 = 2048, 16
    upi3 = jax.random.randint(k_tbl, (num_users, N_POS), 0, 100, dtype=jnp.int32)
    ids3 = jax.random.randint(k_ids, (batch3,), 0, num_users, dtype=jnp.int32)
    out3 = jax.block_until_ready(
        perfect_recommender_forward(ids3, upi3, param, num_items3,
                                    tile_b=8, tile_n=512))
    ref3 = _reference(ids3, upi3, param, num_items3)
    assert jnp.allclose(out3, ref3), "mismatch vs reference (skip-tile case)"

    print("KERNEL_OK")
</pallas_src>

<mosaic_0001>
module attributes {stable_mosaic.version = 11 : i64} {
  func.func @_recommender_kernel(%arg0: i32, %arg1: i32, %arg2: memref<1xi32, #tpu.memory_space<smem>>, %arg3: memref<8x20xi32, #tpu.memory_space<vmem>>, %arg4: memref<1x1xf32, #tpu.memory_space<smem>>, %arg5: memref<8x256xf32, #tpu.memory_space<vmem>>) attributes {dimension_semantics = [#tpu.dimension_semantics<parallel>, #tpu.dimension_semantics<parallel>], iteration_bounds = array<i64: 1, 1>, scalar_prefetch = 1 : i64, scratch_operands = 0 : i64, tpu.core_type = #tpu.core_type<tc>, window_params = [{transform_indices = @transform_0, window_bounds = array<i64: 8, 20>}, {transform_indices = @transform_1, window_bounds = array<i64: 1, 1>}, {transform_indices = @transform_2, window_bounds = array<i64: 8, 256>}]} {
    %c1_i32 = arith.constant 1 : i32
    %0 = arith.muli %arg1, %c1_i32 : i32
    %1 = arith.addi %0, %arg0 : i32
    %2 = arith.index_cast %1 : i32 to index
    %3 = memref.load %arg2[%2] : memref<1xi32, #tpu.memory_space<smem>>
    %c0_i32 = arith.constant 0 : i32
    %4 = arith.cmpi eq, %3, %c0_i32 : i32
    %5 = arith.extui %4 : i1 to i32
    %c0_i32_0 = arith.constant 0 : i32
    %6 = arith.cmpi ne, %5, %c0_i32_0 : i32
    scf.if %6 {
      %cst = arith.constant 0.000000e+00 : f32
      %10 = vector.broadcast %cst : f32 to vector<8x256xf32>
      %c0 = arith.constant 0 : index
      %c0_3 = arith.constant 0 : index
      %11 = vector.load %arg5[%c0, %c0_3] : memref<8x256xf32, #tpu.memory_space<vmem>>, vector<8x256xf32>
      tpu.vector_store %arg5[%c0, %c0_3], %10 {strides = array<i32>} : memref<8x256xf32, #tpu.memory_space<vmem>>, vector<8x256xf32>,
    } else {
    }
    %c0_i32_1 = arith.constant 0 : i32
    %7 = arith.cmpi ne, %3, %c0_i32_1 : i32
    %8 = arith.extui %7 : i1 to i32
    %c0_i32_2 = arith.constant 0 : i32
    %9 = arith.cmpi ne, %8, %c0_i32_2 : i32
    scf.if %9 {
      %10 = tpu.iota {dimensions = array<i32: 1>} : vector<8x256xi32>
      %c0 = arith.constant 0 : index
      %c0_3 = arith.constant 0 : index
      %11 = vector.load %arg3[%c0, %c0_3] : memref<8x20xi32, #tpu.memory_space<vmem>>, vector<8x20xi32>
      %c256_i32 = arith.constant 256 : i32
      %12 = arith.muli %arg0, %c256_i32 : i32
      %13 = vector.broadcast %12 : i32 to vector<8x20xi32>
      %14 = arith.subi %11, %13 : vector<8x20xi32>
      %15 = vector.extract_strided_slice %14 {offsets = [0, 0], sizes = [8, 1], strides = [1, 1]} : vector<8x20xi32> to vector<8x1xi32>
      %16 = vector.broadcast %15 : vector<8x1xi32> to vector<8x256xi32>
      %17 = arith.cmpi eq, %10, %16 : vector<8x256xi32>
      %18 = vector.extract_strided_slice %14 {offsets = [0, 1], sizes = [8, 1], strides = [1, 1]} : vector<8x20xi32> to vector<8x1xi32>
      %19 = vector.broadcast %18 : vector<8x1xi32> to vector<8x256xi32>
      %20 = arith.cmpi eq, %10, %19 : vector<8x256xi32>
      %21 = arith.ori %17, %20 : vector<8x256xi1>
      %22 = vector.extract_strided_slice %14 {offsets = [0, 2], sizes = [8, 1], strides = [1, 1]} : vector<8x20xi32> to vector<8x1xi32>
      %23 = vector.broadcast %22 : vector<8x1xi32> to vector<8x256xi32>
      %24 = arith.cmpi eq, %10, %23 : vector<8x256xi32>
      %25 = arith.ori %21, %24 : vector<8x256xi1>
      %26 = vector.extract_strided_slice %14 {offsets = [0, 3], sizes = [8, 1], strides = [1, 1]} : vector<8x20xi32> to vector<8x1xi32>
      %27 = vector.broadcast %26 : vector<8x1xi32> to vector<8x256xi32>
      %28 = arith.cmpi eq, %10, %27 : vector<8x256xi32>
      %29 = arith.ori %25, %28 : vector<8x256xi1>
      %30 = vector.extract_strided_slice %14 {offsets = [0, 4], sizes = [8, 1], strides = [1, 1]} : vector<8x20xi32> to vector<8x1xi32>
      %31 = vector.broadcast %30 : vector<8x1xi32> to vector<8x256xi32>
      %32 = arith.cmpi eq, %10, %31 : vector<8x256xi32>
      %33 = arith.ori %29, %32 : vector<8x256xi1>
      %34 = vector.extract_strided_slice %14 {offsets = [0, 5], sizes = [8, 1], strides = [1, 1]} : vector<8x20xi32> to vector<8x1xi32>
      %35 = vector.broadcast %34 : vector<8x1xi32> to vector<8x256xi32>
      %36 = arith.cmpi eq, %10, %35 : vector<8x256xi32>
      %37 = arith.ori %33, %36 : vector<8x256xi1>
      %38 = vector.extract_strided_slice %14 {offsets = [0, 6], sizes = [8, 1], strides = [1, 1]} : vector<8x20xi32> to vector<8x1xi32>
      %39 = vector.broadcast %38 : vector<8x1xi32> to vector<8x256xi32>
      %40 = arith.cmpi eq, %10, %39 : vector<8x256xi32>
      %41 = arith.ori %37, %40 : vector<8x256xi1>
      %42 = vector.extract_strided_slice %14 {offsets = [0, 7], sizes = [8, 1], strides = [1, 1]} : vector<8x20xi32> to vector<8x1xi32>
      %43 = vector.broadcast %42 : vector<8x1xi32> to vector<8x256xi32>
      %44 = arith.cmpi eq, %10, %43 : vector<8x256xi32>
      %45 = arith.ori %41, %44 : vector<8x256xi1>
      %46 = vector.extract_strided_slice %14 {offsets = [0, 8], sizes = [8, 1], strides = [1, 1]} : vector<8x20xi32> to vector<8x1xi32>
      %47 = vector.broadcast %46 : vector<8x1xi32> to vector<8x256xi32>
      %48 = arith.cmpi eq, %10, %47 : vector<8x256xi32>
      %49 = arith.ori %45, %48 : vector<8x256xi1>
      %50 = vector.extract_strided_slice %14 {offsets = [0, 9], sizes = [8, 1], strides = [1, 1]} : vector<8x20xi32> to vector<8x1xi32>
      %51 = vector.broadcast %50 : vector<8x1xi32> to vector<8x256xi32>
      %52 = arith.cmpi eq, %10, %51 : vector<8x256xi32>
      %53 = arith.ori %49, %52 : vector<8x256xi1>
      %54 = vector.extract_strided_slice %14 {offsets = [0, 10], sizes = [8, 1], strides = [1, 1]} : vector<8x20xi32> to vector<8x1xi32>
      %55 = vector.broadcast %54 : vector<8x1xi32> to vector<8x256xi32>
      %56 = arith.cmpi eq, %10, %55 : vector<8x256xi32>
      %57 = arith.ori %53, %56 : vector<8x256xi1>
      %58 = vector.extract_strided_slice %14 {offsets = [0, 11], sizes = [8, 1], strides = [1, 1]} : vector<8x20xi32> to vector<8x1xi32>
      %59 = vector.broadcast %58 : vector<8x1xi32> to vector<8x256xi32>
      %60 = arith.cmpi eq, %10, %59 : vector<8x256xi32>
      %61 = arith.ori %57, %60 : vector<8x256xi1>
      %62 = vector.extract_strided_slice %14 {offsets = [0, 12], sizes = [8, 1], strides = [1, 1]} : vector<8x20xi32> to vector<8x1xi32>
      %63 = vector.broadcast %62 : vector<8x1xi32> to vector<8x256xi32>
      %64 = arith.cmpi eq, %10, %63 : vector<8x256xi32>
      %65 = arith.ori %61, %64 : vector<8x256xi1>
      %66 = vector.extract_strided_slice %14 {offsets = [0, 13], sizes = [8, 1], strides = [1, 1]} : vector<8x20xi32> to vector<8x1xi32>
      %67 = vector.broadcast %66 : vector<8x1xi32> to vector<8x256xi32>
      %68 = arith.cmpi eq, %10, %67 : vector<8x256xi32>
      %69 = arith.ori %65, %68 : vector<8x256xi1>
      %70 = vector.extract_strided_slice %14 {offsets = [0, 14], sizes = [8, 1], strides = [1, 1]} : vector<8x20xi32> to vector<8x1xi32>
      %71 = vector.broadcast %70 : vector<8x1xi32> to vector<8x256xi32>
      %72 = arith.cmpi eq, %10, %71 : vector<8x256xi32>
      %73 = arith.ori %69, %72 : vector<8x256xi1>
      %74 = vector.extract_strided_slice %14 {offsets = [0, 15], sizes = [8, 1], strides = [1, 1]} : vector<8x20xi32> to vector<8x1xi32>
      %75 = vector.broadcast %74 : vector<8x1xi32> to vector<8x256xi32>
      %76 = arith.cmpi eq, %10, %75 : vector<8x256xi32>
      %77 = arith.ori %73, %76 : vector<8x256xi1>
      %78 = vector.extract_strided_slice %14 {offsets = [0, 16], sizes = [8, 1], strides = [1, 1]} : vector<8x20xi32> to vector<8x1xi32>
      %79 = vector.broadcast %78 : vector<8x1xi32> to vector<8x256xi32>
      %80 = arith.cmpi eq, %10, %79 : vector<8x256xi32>
      %81 = arith.ori %77, %80 : vector<8x256xi1>
      %82 = vector.extract_strided_slice %14 {offsets = [0, 17], sizes = [8, 1], strides = [1, 1]} : vector<8x20xi32> to vector<8x1xi32>
      %83 = vector.broadcast %82 : vector<8x1xi32> to vector<8x256xi32>
      %84 = arith.cmpi eq, %10, %83 : vector<8x256xi32>
      %85 = arith.ori %81, %84 : vector<8x256xi1>
      %86 = vector.extract_strided_slice %14 {offsets = [0, 18], sizes = [8, 1], strides = [1, 1]} : vector<8x20xi32> to vector<8x1xi32>
      %87 = vector.broadcast %86 : vector<8x1xi32> to vector<8x256xi32>
      %88 = arith.cmpi eq, %10, %87 : vector<8x256xi32>
      %89 = arith.ori %85, %88 : vector<8x256xi1>
      %90 = vector.extract_strided_slice %14 {offsets = [0, 19], sizes = [8, 1], strides = [1, 1]} : vector<8x20xi32> to vector<8x1xi32>
      %91 = vector.broadcast %90 : vector<8x1xi32> to vector<8x256xi32>
      %92 = arith.cmpi eq, %10, %91 : vector<8x256xi32>
      %93 = arith.ori %89, %92 : vector<8x256xi1>
      %c0_4 = arith.constant 0 : index
      %c0_5 = arith.constant 0 : index
      %94 = memref.load %arg4[%c0_4, %c0_5] : memref<1x1xf32, #tpu.memory_space<smem>>
      %cst = arith.constant 1.000000e+02 : f32
      %95 = arith.addf %94, %cst : f32
      %cst_6 = arith.constant 0.000000e+00 : f32
      %96 = vector.broadcast %95 : f32 to vector<8x256xf32>
      %97 = vector.broadcast %cst_6 : f32 to vector<8x256xf32>
      %98 = arith.select %93, %96, %97 : vector<8x256xi1>, vector<8x256xf32>
      %c0_7 = arith.constant 0 : index
      %c0_8 = arith.constant 0 : index
      %99 = vector.load %arg5[%c0_7, %c0_8] : memref<8x256xf32, #tpu.memory_space<vmem>>, vector<8x256xf32>
      tpu.vector_store %arg5[%c0_7, %c0_8], %98 {strides = array<i32>} : memref<8x256xf32, #tpu.memory_space<vmem>>, vector<8x256xf32>,
    } else {
    }
    return
  }
  func.func @transform_0(%arg0: i32, %arg1: i32, %arg2: memref<1xi32, #tpu.memory_space<smem>>) -> (i32, i32) {
    %c0_i32 = arith.constant 0 : i32
    %c0_i32_0 = arith.constant 0 : i32
    return %arg1, %c0_i32 : i32, i32
  }
  func.func @transform_1(%arg0: i32, %arg1: i32, %arg2: memref<1xi32, #tpu.memory_space<smem>>) -> (i32, i32) {
    %c0_i32 = arith.constant 0 : i32
    %c0_i32_0 = arith.constant 0 : i32
    %c0_i32_1 = arith.constant 0 : i32
    return %c0_i32, %c0_i32_0 : i32, i32
  }
  func.func @transform_2(%arg0: i32, %arg1: i32, %arg2: memref<1xi32, #tpu.memory_space<smem>>) -> (i32, i32) {
    %c0_i32 = arith.constant 0 : i32
    return %arg1, %arg0 : i32, i32
  }
}

</mosaic_0001>

<bundles_post_ra>
// kernel: tpu_custom_call.1
= control target key start
LH: loop header
LB: loop body
LE: loop exit
PB: predicated region body
PF: predicated region fallthrough
CT: control target
= control target key end

     0   :  { %s421_s0 = inlined_call_operand.<no memory space> [shape: s32[1], index: 0, kind: input, shape index: {}]   ;;  %s422_s1 = inlined_call_operand.hbm [shape: s32[8,20], index: 1, kind: input, shape index: {}]   ;;  %s423_s2 = inlined_call_operand.<no memory space> [shape: f32[1,1], index: 2, kind: input, shape index: {}]   ;;  %s424_s3 = inlined_call_operand.hbm [shape: f32[8,256], index: 3, kind: output, shape index: {}]  }
   0x1   :  { %9 = sst [smem:[#allocation4]] %s423_s2 }
   0x2   :  { %10 = vsyncpa [#allocation6], 0 }
   0x3   :  { %11 = vsyncpa [#allocation7], 0  ;;  %s300_s14 = smov [#allocation5]   ;;  %s252_s18 = scalar_lea.hbm %s422_s1, 128 }
   0x4   :  { %s18_s15 = sshll.u32 %s300_s14, 4  ;;  %p253_p0 = scmp.ne.s32.totalorder %s422_s1, %s252_s18  ;;  %s19_s15 = int_to_ptr.vmem [resolvable:$true] %s18_s15 }
   0x5   :  { %p256_p1 = scmp.lt.u32.totalorder %s252_s18, %s422_s1 }
   0x7   :  { %p258_p2 = pnand %p256_p1, %p253_p0 }
   0x9   :  { %261 = shalt.err (!%p258_p2)
}
   0xa   :  { %s262_s2 = scalar_lea.vmem %s19_s15, 128  ;;  %p267_p4 = scmp.lt.s32.totalorder %s19_s15, %s19_s15 }
   0xb   :  { %p263_p3 = scmp.ne.s32.totalorder %s19_s15, %s262_s2  ;;  %p268_p5 = scmp.lt.s32.totalorder %s262_s2, %s262_s2 }
   0xd   :  { %p269_p6 = por %p268_p5, %p267_p4 }
   0xf   :  { %p270_p7 = pnand %p269_p6, %p263_p3 }
  0x11   :  { %273 = shalt.err (!%p270_p7)
}
  0x12   :  { %21 = dma.hbm_to_vmem [thread:$0]  %s422_s1, 128, %s19_s15, [#allocation6]  }
  0x13   :  { %296 = dma.done.wait [#allocation6], 128  }
  0x14   :  { %297 = vsyncadd [#allocation6], 4294967168  ;;  %p206_p8 = scmp.ne.s32.totalorder %s421_s0, 0 }
  0x15   :  { %v301_v0 = vmov (!%p206_p8), 0.0  }
  0x16   :  { %32 = sbr.rel (%p206_p8) target bundleno = 29 (0x1d), region = 17  ;;  %33 = vst [vmem:[#allocation8] sm:$0xff] (!%p206_p8), %v301_v0  ;;  %34 = vst [vmem:[#allocation8 + $0x8] sm:$0xff] (!%p206_p8), %v301_v0 }
  0x1d PF:  { %p207_p9 = scmp.eq.s32.totalorder %s421_s0, 0 }
  0x1e   :  { %v42_v1 = vld [vmem:[#allocation5] sm:$0xff] (!%p207_p9)  ;;  %v302_v2 = vmov (!%p207_p9), 2   ;;  %v303_v3 = vmov (!%p207_p9), 0   ;;  %v304_v4 = vmov (!%p207_p9), 3   ;;  %v305_v5 = vmov (!%p207_p9), 1   ;;  %s184_s0 = sld [smem:[#allocation4]] (!%p207_p9) }
  0x1f   :  { %38 = sbr.rel (%p207_p9) target bundleno = 225 (0xe1), region = 21  ;;  %233 = vset.pattern.permute.xlu1 (!%p207_p9), %v302_v2  ;;  %231 = vset.pattern.permute.xlu0 (!%p207_p9), %v303_v3  ;;  %v306_v6 = vmov (!%p207_p9), 4   ;;  %v307_v7 = vmov (!%p207_p9), 5   ;;  %v308_v8 = vmov (!%p207_p9), 6   ;;  %v309_v9 = vmov (!%p207_p9), 8  }
  0x20   :  { %59 = vperm.xlu1 (!%p207_p9), %233, %v42_v1   ;;  %47 = vperm.xlu0 (!%p207_p9), %231, %v42_v1   ;;  %v310_v10 = vmov (!%p207_p9), 7   ;;  %v311_v11 = vmov (!%p207_p9), 11   ;;  %v312_v12 = vmov (!%p207_p9), 9   ;;  %v313_v13 = vmov (!%p207_p9), 14  }
  0x21   :  { %v314_v14 = vmov (!%p207_p9), 10   ;;  %v315_v15 = vmov (!%p207_p9), 17   ;;  %v316_v16 = vmov (!%p207_p9), 12   ;;  %v317_v17 = vmov (!%p207_p9), 19  }
  0x22   :  { %v318_v18 = vmov (!%p207_p9), 13   ;;  %v319_v19 = vmov (!%p207_p9), 15   ;;  %v320_v20 = vmov (!%p207_p9), 16   ;;  %v321_v21 = vmov (!%p207_p9), 18  }
  0x23   :  { %v39_v24 = vlaneseq (!%p207_p9) }
  0x24   :  { %234 = vset.pattern.permute.xlu1 (!%p207_p9), %v304_v4  ;;  %232 = vset.pattern.permute.xlu0 (!%p207_p9), %v305_v5  ;;  %s185_s1 = sadd.f32 (!%p207_p9), 100.0, %s184_s0 }
  0x25   :  { %66 = vperm.xlu1 (!%p207_p9), %234, %v42_v1   ;;  %52 = vperm.xlu0 (!%p207_p9), %232, %v42_v1   ;;  %v364_v27 = vand.u32 (!%p207_p9), 127, %v39_v24 }
  0x26   :  { %v186_v44 = vstv %s185_s1 }
  0x27   :  { %v367_v29 = vadd.s32 128, %v364_v27 }
  0x29   :  { %235 = vset.pattern.permute.xlu1 %v306_v6  ;;  %236 = vset.pattern.permute.xlu0 %v307_v7 }
  0x2a   :  { %73 = vperm.xlu1 %235, %v42_v1   ;;  %80 = vperm.xlu0 %236, %v42_v1  }
  0x2e   :  { %237 = vset.pattern.permute.xlu1 %v308_v8  ;;  %239 = vset.pattern.permute.xlu0 %v309_v9 }
  0x2f   :  { %87 = vperm.xlu1 %237, %v42_v1   ;;  %101 = vperm.xlu0 %239, %v42_v1  }
  0x33   :  { %238 = vset.pattern.permute.xlu1 %v310_v10  ;;  %242 = vset.pattern.permute.xlu0 %v311_v11 }
  0x34   :  { %94 = vperm.xlu1 %238, %v42_v1   ;;  %122 = vperm.xlu0 %242, %v42_v1  }
  0x38   :  { %240 = vset.pattern.permute.xlu1 %v312_v12  ;;  %245 = vset.pattern.permute.xlu0 %v313_v13 }
  0x39   :  { %108 = vperm.xlu1 %240, %v42_v1   ;;  %143 = vperm.xlu0 %245, %v42_v1  }
  0x3d   :  { %241 = vset.pattern.permute.xlu1 %v314_v14  ;;  %248 = vset.pattern.permute.xlu0 %v315_v15 }
  0x3e   :  { %115 = vperm.xlu1 %241, %v42_v1   ;;  %164 = vperm.xlu0 %248, %v42_v1  }
  0x42   :  { %243 = vset.pattern.permute.xlu1 %v316_v16  ;;  %251 = vset.pattern.permute.xlu0 %v317_v17 }
  0x43   :  { %129 = vperm.xlu1 %243, %v42_v1  }
  0x47   :  { %244 = vset.pattern.permute.xlu1 %v318_v18 }
  0x48   :  { %136 = vperm.xlu1 %244, %v42_v1  }
  0x4c   :  { %246 = vset.pattern.permute.xlu1 %v319_v19 }
  0x4d   :  { %150 = vperm.xlu1 %246, %v42_v1  }
  0x51   :  { %247 = vset.pattern.permute.xlu1 %v320_v20 }
  0x52   :  { %157 = vperm.xlu1 %247, %v42_v1  }
  0x56   :  { %249 = vset.pattern.permute.xlu1 %v321_v21 }
  0x57   :  { %171 = vperm.xlu1 %249, %v42_v1  }
  0x5b   :  { %250 = vset.pattern.permute.xlu1 %v317_v17 }
  0x5c   :  { %178 = vperm.xlu1 %250, %v42_v1  }
  0x9f   :  { %v60_v22 = vpop.permute.xlu1 %59  ;;  %v48_v25 = vpop.permute.xlu0 %47 }
  0xa0   :  { %vm49_vm0 = vcmp.eq.s32.totalorder %v364_v27, %v48_v25  ;;  %vm50_vm2 = vcmp.eq.s32.totalorder %v367_v29, %v48_v25  ;;  %vm61_vm6 = vcmp.eq.s32.totalorder %v364_v27, %v60_v22  ;;  %vm62_vm7 = vcmp.eq.s32.totalorder %v367_v29, %v60_v22 }
  0xa4   :  { %v67_v23 = vpop.permute.xlu1 %66  ;;  %v53_v28 = vpop.permute.xlu0 %52 }
  0xa5   :  { %vm54_vm1 = vcmp.eq.s32.totalorder %v364_v27, %v53_v28  ;;  %vm55_vm3 = vcmp.eq.s32.totalorder %v367_v29, %v53_v28  ;;  %vm68_vm10 = vcmp.eq.s32.totalorder %v364_v27, %v67_v23  ;;  %vm69_vm12 = vcmp.eq.s32.totalorder %v367_v29, %v67_v23 }
  0xa6   :  { %vm56_vm4 = vmor %vm49_vm0, %vm54_vm1 }
  0xa7   :  { %vm57_vm5 = vmor %vm50_vm2, %vm55_vm3 }
  0xa8   :  { %vm63_vm8 = vmor %vm56_vm4, %vm61_vm6 }
  0xa9   :  { %v74_v26 = vpop.permute.xlu1 %73  ;;  %vm64_vm9 = vmor %vm57_vm5, %vm62_vm7  ;;  %v81_v32 = vpop.permute.xlu0 %80 }
  0xaa   :  { %vm75_vm11 = vcmp.eq.s32.totalorder %v364_v27, %v74_v26  ;;  %vm70_vm13 = vmor %vm63_vm8, %vm68_vm10  ;;  %vm76_vm14 = vcmp.eq.s32.totalorder %v367_v29, %v74_v26  ;;  %vm82_vm1 = vcmp.eq.s32.totalorder %v364_v27, %v81_v32  ;;  %vm83_vm3 = vcmp.eq.s32.totalorder %v367_v29, %v81_v32 }
  0xab   :  { %vm71_vm15 = vmor %vm64_vm9, %vm69_vm12 }
  0xac   :  { %vm77_vm0 = vmor %vm70_vm13, %vm75_vm11 }
  0xad   :  { %vm78_vm2 = vmor %vm71_vm15, %vm76_vm14 }
  0xae   :  { %v88_v30 = vpop.permute.xlu1 %87  ;;  %vm84_vm5 = vmor %vm77_vm0, %vm82_vm1  ;;  %v102_v35 = vpop.permute.xlu0 %101 }
  0xaf   :  { %vm89_vm4 = vcmp.eq.s32.totalorder %v364_v27, %v88_v30  ;;  %vm90_vm6 = vcmp.eq.s32.totalorder %v367_v29, %v88_v30  ;;  %vm85_vm7 = vmor %vm78_vm2, %vm83_vm3  ;;  %vm103_vm13 = vcmp.eq.s32.totalorder %v364_v27, %v102_v35  ;;  %vm104_vm15 = vcmp.eq.s32.totalorder %v367_v29, %v102_v35 }
  0xb0   :  { %vm91_vm10 = vmor %vm84_vm5, %vm89_vm4 }
  0xb1   :  { %vm92_vm12 = vmor %vm85_vm7, %vm90_vm6 }
  0xb3   :  { %v95_v31 = vpop.permute.xlu1 %94  ;;  %v123_v37 = vpop.permute.xlu0 %122 }
  0xb4   :  { %vm96_vm8 = vcmp.eq.s32.totalorder %v364_v27, %v95_v31  ;;  %vm97_vm9 = vcmp.eq.s32.totalorder %v367_v29, %v95_v31 }
  0xb5   :  { %vm98_vm11 = vmor %vm91_vm10, %vm96_vm8  ;;  %vm124_vm10 = vcmp.eq.s32.totalorder %v364_v27, %v123_v37 }
  0xb6   :  { %vm99_vm14 = vmor %vm92_vm12, %vm97_vm9  ;;  %vm125_vm12 = vcmp.eq.s32.totalorder %v367_v29, %v123_v37 }
  0xb7   :  { %vm105_vm1 = vmor %vm98_vm11, %vm103_vm13 }
  0xb8   :  { %v109_v33 = vpop.permute.xlu1 %108  ;;  %vm106_vm3 = vmor %vm99_vm14, %vm104_vm15  ;;  %v144_v39 = vpop.permute.xlu0 %143 }
  0xb9   :  { %vm110_vm0 = vcmp.eq.s32.totalorder %v364_v27, %v109_v33  ;;  %vm111_vm2 = vcmp.eq.s32.totalorder %v367_v29, %v109_v33 }
  0xba   :  { %vm112_vm5 = vmor %vm105_vm1, %vm110_vm0 }
  0xbb   :  { %vm113_vm7 = vmor %vm106_vm3, %vm111_vm2 }
  0xbd   :  { %v116_v34 = vpop.permute.xlu1 %115  ;;  %v165_v42 = vpop.permute.xlu0 %164 }
  0xbe   :  { %vm117_vm4 = vcmp.eq.s32.totalorder %v364_v27, %v116_v34  ;;  %vm118_vm6 = vcmp.eq.s32.totalorder %v367_v29, %v116_v34 }
  0xbf   :  { %vm119_vm8 = vmor %vm112_vm5, %vm117_vm4  ;;  %vm145_vm5 = vcmp.eq.s32.totalorder %v364_v27, %v144_v39 }
  0xc0   :  { %vm120_vm9 = vmor %vm113_vm7, %vm118_vm6  ;;  %vm146_vm7 = vcmp.eq.s32.totalorder %v367_v29, %v144_v39 }
  0xc1   :  { %vm126_vm13 = vmor %vm119_vm8, %vm124_vm10 }
  0xc2   :  { %v130_v36 = vpop.permute.xlu1 %129  ;;  %vm127_vm15 = vmor %vm120_vm9, %vm125_vm12 }
  0xc3   :  { %vm131_vm11 = vcmp.eq.s32.totalorder %v364_v27, %v130_v36  ;;  %vm132_vm14 = vcmp.eq.s32.totalorder %v367_v29, %v130_v36 }
  0xc4   :  { %vm133_vm1 = vmor %vm126_vm13, %vm131_vm11 }
  0xc5   :  { %vm134_vm3 = vmor %vm127_vm15, %vm132_vm14 }
  0xc7   :  { %v137_v38 = vpop.permute.xlu1 %136 }
  0xc8   :  { %vm138_vm0 = vcmp.eq.s32.totalorder %v364_v27, %v137_v38  ;;  %vm139_vm2 = vcmp.eq.s32.totalorder %v367_v29, %v137_v38 }
  0xc9   :  { %vm140_vm4 = vmor %vm133_vm1, %vm138_vm0  ;;  %vm166_vm1 = vcmp.eq.s32.totalorder %v364_v27, %v165_v42 }
  0xca   :  { %vm141_vm6 = vmor %vm134_vm3, %vm139_vm2  ;;  %vm167_vm3 = vcmp.eq.s32.totalorder %v367_v29, %v165_v42 }
  0xcb   :  { %vm147_vm10 = vmor %vm140_vm4, %vm145_vm5 }
  0xcc   :  { %v151_v40 = vpop.permute.xlu1 %150  ;;  %vm148_vm12 = vmor %vm141_vm6, %vm146_vm7 }
  0xcd   :  { %vm152_vm8 = vcmp.eq.s32.totalorder %v364_v27, %v151_v40  ;;  %vm153_vm9 = vcmp.eq.s32.totalorder %v367_v29, %v151_v40 }
  0xce   :  { %vm154_vm13 = vmor %vm147_vm10, %vm152_vm8 }
  0xcf   :  { %vm155_vm15 = vmor %vm148_vm12, %vm153_vm9 }
  0xd1   :  { %v158_v41 = vpop.permute.xlu1 %157 }
  0xd2   :  { %vm159_vm11 = vcmp.eq.s32.totalorder %v364_v27, %v158_v41  ;;  %vm160_vm14 = vcmp.eq.s32.totalorder %v367_v29, %v158_v41 }
  0xd3   :  { %vm161_vm0 = vmor %vm154_vm13, %vm159_vm11 }
  0xd4   :  { %vm162_vm2 = vmor %vm155_vm15, %vm160_vm14 }
  0xd5   :  { %vm168_vm5 = vmor %vm161_vm0, %vm166_vm1 }
  0xd6   :  { %v172_v43 = vpop.permute.xlu1 %171  ;;  %vm169_vm7 = vmor %vm162_vm2, %vm167_vm3 }
  0xd7   :  { %vm173_vm4 = vcmp.eq.s32.totalorder %v364_v27, %v172_v43  ;;  %vm174_vm6 = vcmp.eq.s32.totalorder %v367_v29, %v172_v43 }
  0xd8   :  { %vm175_vm8 = vmor %vm168_vm5, %vm173_vm4 }
  0xd9   :  { %vm176_vm10 = vmor %vm169_vm7, %vm174_vm6 }
  0xdb   :  { %v179_v45 = vpop.permute.xlu1 %178 }
  0xdc   :  { %vm180_vm9 = vcmp.eq.s32.totalorder %v364_v27, %v179_v45  ;;  %vm181_vm12 = vcmp.eq.s32.totalorder %v367_v29, %v179_v45 }
  0xdd   :  { %vm182_vm11 = vmor %vm175_vm8, %vm180_vm9 }
  0xde   :  { %vm183_vm13 = vmor %vm176_vm10, %vm181_vm12  ;;  %v187_v46 = vsel %vm182_vm11, %v186_v44, 0.0 }
  0xdf   :  { %v188_v47 = vsel %vm183_vm13, %v186_v44, 0.0  ;;  %189 = vst [vmem:[#allocation8] sm:$0xff] %v187_v46 }
  0xe0   :  { %190 = vst [vmem:[#allocation8 + $0x8] sm:$0xff] %v188_v47 }
  0xe1 PF:  { %s322_s29 = smov [#allocation8]  }
  0xe2   :  { %s197_s30 = sshll.u32 %s322_s29, 4  ;;  %s198_s30 = int_to_ptr.vmem [resolvable:$true] %s197_s30 }
  0xe3   :  { %s274_s4 = scalar_lea.vmem %s198_s30, 256  ;;  %p279_p11 = scmp.lt.s32.totalorder %s198_s30, %s198_s30 }
  0xe4   :  { %p275_p10 = scmp.ne.s32.totalorder %s198_s30, %s274_s4  ;;  %p280_p12 = scmp.lt.s32.totalorder %s274_s4, %s274_s4 }
  0xe6   :  { %p281_p13 = por %p280_p12, %p279_p11 }
  0xe8   :  { %p282_p0 = pnand %p281_p13, %p275_p10 }
  0xea   :  { %285 = shalt.err (!%p282_p0)
}
  0xeb   :  { %s286_s7 = scalar_lea.hbm %s424_s3, 256 }
  0xec   :  { %p287_p1 = scmp.ne.s32.totalorder %s424_s3, %s286_s7  ;;  %p290_p2 = scmp.lt.u32.totalorder %s286_s7, %s424_s3 }
  0xee   :  { %p292_p3 = pnand %p290_p2, %p287_p1 }
  0xf0   :  { %295 = shalt.err (!%p292_p3)
}
  0xf1   :  { %200 = dma.vmem_to_hbm [thread:$0]  %s198_s30, 256, %s424_s3, [#allocation7]  }
  0xf2   :  { %298 = dma.done.wait [#allocation7], 256  }
  0xf3   :  { %299 = vsyncadd [#allocation7], 4294967040 }
  0xf4   :  { %204 = vsyncpa [#allocation6], 1 }
  0xf5   :  { %205 = vsyncpa [#allocation7], 1 }

</bundles_post_ra>
